<compile_context>
chip_gen: v5e
topology: v5e:2x2
jax: 0.10.0
libtpu: 0.0.40
codegen_flags: <defaults>
</compile_context>

<pallas_src>
import jax
import jax.numpy as jnp
from jax.experimental import pallas as pl
from jax.experimental.pallas import tpu as pltpu

_LANES = 128          # vreg lane width
_SUBLANES = 8         # f32 sublane count
_MAX_TILE_ROWS = 512  # 512 rows x 128 lanes = 65,536 samples, ~1.5 MiB input block


def _cdiv(a, b):
    return -(-a // b)


def _round_up(x, m):
    return _cdiv(x, m) * m


def _choose_num_tiles(rows):
    """Grid size: tiles <= _MAX_TILE_ROWS rows, >= 2 (even) steps when there is
    enough work so the pipeline double-buffers and v7x can use both TCs."""
    if rows <= _SUBLANES:
        return 1
    min_tiles = 2 if rows <= 4 * _SUBLANES else 4
    num_tiles = max(_cdiv(rows, _MAX_TILE_ROWS), min_tiles)
    if num_tiles > 1 and num_tiles % 2 == 1:
        num_tiles += 1  # even tile count -> clean split across 2 TensorCores
    return num_tiles


def _mass_products(m_i, m_j, m_k):
    m_i = jnp.asarray(m_i, jnp.float32)
    m_j = jnp.asarray(m_j, jnp.float32)
    m_k = jnp.asarray(m_k, jnp.float32)
    return jnp.stack([m_i * m_j, m_i * m_k, m_j * m_k])


def _vq_kernel(m_ref, q_ref, o_ref):
    # m_ref: (3,) f32 in SMEM -- [m_i*m_j, m_i*m_k, m_j*m_k]
    # q_ref: (6, tile_rows, 128) f32 -- component-planar, batch dense on (sublane, lane)
    # o_ref: (tile_rows, 128) f32
    m_ij = m_ref[0]
    m_ik = m_ref[1]
    m_jk = m_ref[2]

    q_i_x = q_ref[0]
    q_i_y = q_ref[1]
    q_j_x = q_ref[2]
    q_j_y = q_ref[3]
    q_k_x = q_ref[4]
    q_k_y = q_ref[5]

    dx_ij = q_j_x - q_i_x
    dy_ij = q_j_y - q_i_y
    dx_ik = q_k_x - q_i_x
    dy_ik = q_k_y - q_i_y
    dx_jk = q_k_x - q_j_x
    dy_jk = q_k_y - q_j_y

    # -(m*m) * rsqrt(d2): one EUP op per pair instead of sqrt followed by divide.
    term_ij = (-m_ij) * jax.lax.rsqrt(dx_ij * dx_ij + dy_ij * dy_ij)
    term_ik = (-m_ik) * jax.lax.rsqrt(dx_ik * dx_ik + dy_ik * dy_ik)
    term_jk = (-m_jk) * jax.lax.rsqrt(dx_jk * dx_jk + dy_jk * dy_jk)

    o_ref[...] = term_ij + term_ik + term_jk


def _pallas_vq(q_planar, m_prod, tile_rows, num_tiles):
    rows = num_tiles * tile_rows
    n = rows * _LANES
    return pl.pallas_call(
        _vq_kernel,
        out_shape=jax.ShapeDtypeStruct((rows, _LANES), jnp.float32),
        grid=(num_tiles,),
        in_specs=[
            pl.BlockSpec(memory_space=pltpu.MemorySpace.SMEM),            # masses
            pl.BlockSpec((6, tile_rows, _LANES), lambda i: (0, i, 0)),    # coords
        ],
        out_specs=pl.BlockSpec((tile_rows, _LANES), lambda i: (i, 0)),
        compiler_params=pltpu.CompilerParams(
            dimension_semantics=("parallel",),   # independent tiles -> both TCs on v7x
            # Let XLA fuse the AoS->planar relayout per-block into the input
            # pipeline instead of materializing [6, B] in HBM (review option (b)).
            allow_input_fusion=(False, True),
        ),
        cost_estimate=pl.CostEstimate(
            flops=20 * n, transcendentals=3 * n, bytes_accessed=28 * n
        ),
    )(m_prod, q_planar)


def vq_planar_pallas(q_planar, m_i, m_j, m_k, *, tile_rows=None):
    """Component-planar fast path (no staging relayout needed).

    q_planar: [6, rows, 128] float32; component c of sample (r*128 + l) lives at
              q_planar[c, r, l].  rows must be a multiple of 8.
    Returns:  [rows, 128] float32 potential energies (same sample ordering).
    """
    six, rows, lanes = q_planar.shape
    if six != 6 or lanes != _LANES or rows % _SUBLANES != 0:
        raise ValueError("q_planar must have shape [6, 8k, 128]")

    if tile_rows is None:
        tile_rows = rows
        want_tiles = _choose_num_tiles(rows)
        for nt in range(want_tiles, rows // _SUBLANES + 1):
            if rows % nt == 0 and (rows // nt) % _SUBLANES == 0:
                tile_rows = rows // nt
                break
    if rows % tile_rows != 0 or tile_rows % _SUBLANES != 0:
        raise ValueError("tile_rows must be a multiple of 8 that divides rows")
    num_tiles = rows // tile_rows

    m_prod = _mass_products(m_i, m_j, m_k)
    return _pallas_vq(q_planar.astype(jnp.float32), m_prod, tile_rows, num_tiles)


@jax.jit
def vq_pallas(q, m_i, m_j, m_k):
    """PyTorch-equivalent forward: q [B, 6] float -> [B] float32."""
    B = q.shape[0]
    q = q.astype(jnp.float32)

    rows = max(1, _cdiv(B, _LANES))
    num_tiles = _choose_num_tiles(rows)
    tile_rows = _round_up(_cdiv(rows, num_tiles), _SUBLANES)
    rows_pad = num_tiles * tile_rows
    b_pad = rows_pad * _LANES

    if b_pad != B:
        # Finite filler sample (bodies at distinct positions) so padded lanes never
        # hold inf/NaN (even if a mass is 0); they are sliced off below anyway.
        filler = jnp.tile(
            jnp.asarray([[0.0, 0.0, 1.0, 0.0, 0.0, 1.0]], jnp.float32),
            (b_pad - B, 1))
        q = jnp.concatenate([q, filler], axis=0)

    # AoS [b_pad, 6] -> component-planar [6, rows_pad, 128].  With
    # allow_input_fusion set on the pallas_call, XLA may compute this relayout
    # per-block inside the kernel's input pipeline rather than materializing it.
    q_planar = q.T.reshape(6, rows_pad, _LANES)

    m_prod = _mass_products(m_i, m_j, m_k)
    out = _pallas_vq(q_planar, m_prod, tile_rows, num_tiles)
    return out.reshape(b_pad)[:B]


def vq_reference(q, m_i, m_j, m_k):
    q = q.astype(jnp.float32)
    q_i_x, q_i_y = q[:, 0], q[:, 1]
    q_j_x, q_j_y = q[:, 2], q[:, 3]
    q_k_x, q_k_y = q[:, 4], q[:, 5]
    i_j = -1.0 * (m_i * m_j) / jnp.sqrt((q_j_x - q_i_x) ** 2 + (q_j_y - q_i_y) ** 2)
    i_k = -1.0 * (m_i * m_k) / jnp.sqrt((q_k_x - q_i_x) ** 2 + (q_k_y - q_i_y) ** 2)
    j_k = -1.0 * (m_j * m_k) / jnp.sqrt((q_k_x - q_j_x) ** 2 + (q_k_y - q_j_y) ** 2)
    return i_j + i_k + j_k


if __name__ == "__main__":
    # Deterministic "parameters" of the module: the three masses (runtime scalars now).
    m_i, m_j, m_k = 1.0, 1.5, 2.0

    key = jax.random.PRNGKey(0)
    # Small-shape checks consistent with the module's [B, 6] input: one tiny batch
    # (exercises padding) and one tile-aligned batch (exercises the 2-step grid).
    for B in (8, 2048):
        key, sub = jax.random.split(key)
        q = jax.random.normal(sub, (B, 6), dtype=jnp.float32)

        out = jax.block_until_ready(vq_pallas(q, m_i, m_j, m_k))
        ref = vq_reference(q, m_i, m_j, m_k)

        assert out.shape == (B,)
        assert jnp.allclose(out, ref, rtol=1e-5, atol=1e-5), (B, out, ref)

    # Exercise the component-planar producer fast path as well.
    rows = 16
    key, sub = jax.random.split(key)
    q_planar = jax.random.normal(sub, (6, rows, _LANES), dtype=jnp.float32)
    out_p = jax.block_until_ready(vq_planar_pallas(q_planar, m_i, m_j, m_k))
    ref_p = vq_reference(q_planar.reshape(6, -1).T, m_i, m_j, m_k).reshape(rows, _LANES)
    assert jnp.allclose(out_p, ref_p, rtol=1e-5, atol=1e-5)

    print("KERNEL_OK")
</pallas_src>

<mosaic_0001>
module attributes {stable_mosaic.version = 11 : i64} {
  func.func @_vq_kernel(%arg0: i32, %arg1: memref<3xf32, #tpu.memory_space<smem>>, %arg2: memref<6x8x128xf32, #tpu.memory_space<vmem>>, %arg3: memref<8x128xf32, #tpu.memory_space<vmem>>) attributes {dimension_semantics = [#tpu.dimension_semantics<parallel>], iteration_bounds = array<i64: 1>, scalar_prefetch = 0 : i64, scratch_operands = 0 : i64, tpu.core_type = #tpu.core_type<tc>, window_params = [{transform_indices = @transform_0, window_bounds = array<i64: 3>}, {transform_indices = @transform_1, window_bounds = array<i64: 6, 8, 128>}, {transform_indices = @transform_2, window_bounds = array<i64: 8, 128>}]} {
    %c0 = arith.constant 0 : index
    %0 = memref.load %arg1[%c0] : memref<3xf32, #tpu.memory_space<smem>>
    %c1 = arith.constant 1 : index
    %1 = memref.load %arg1[%c1] : memref<3xf32, #tpu.memory_space<smem>>
    %c2 = arith.constant 2 : index
    %2 = memref.load %arg1[%c2] : memref<3xf32, #tpu.memory_space<smem>>
    %c0_0 = arith.constant 0 : index
    %c0_1 = arith.constant 0 : index
    %c0_2 = arith.constant 0 : index
    %3 = vector.load %arg2[%c0_0, %c0_1, %c0_2] : memref<6x8x128xf32, #tpu.memory_space<vmem>>, vector<1x8x128xf32>
    %4 = vector.shape_cast %3 : vector<1x8x128xf32> to vector<8x128xf32>
    %c1_3 = arith.constant 1 : index
    %c0_4 = arith.constant 0 : index
    %c0_5 = arith.constant 0 : index
    %5 = vector.load %arg2[%c1_3, %c0_4, %c0_5] : memref<6x8x128xf32, #tpu.memory_space<vmem>>, vector<1x8x128xf32>
    %6 = vector.shape_cast %5 : vector<1x8x128xf32> to vector<8x128xf32>
    %c2_6 = arith.constant 2 : index
    %c0_7 = arith.constant 0 : index
    %c0_8 = arith.constant 0 : index
    %7 = vector.load %arg2[%c2_6, %c0_7, %c0_8] : memref<6x8x128xf32, #tpu.memory_space<vmem>>, vector<1x8x128xf32>
    %8 = vector.shape_cast %7 : vector<1x8x128xf32> to vector<8x128xf32>
    %c3 = arith.constant 3 : index
    %c0_9 = arith.constant 0 : index
    %c0_10 = arith.constant 0 : index
    %9 = vector.load %arg2[%c3, %c0_9, %c0_10] : memref<6x8x128xf32, #tpu.memory_space<vmem>>, vector<1x8x128xf32>
    %10 = vector.shape_cast %9 : vector<1x8x128xf32> to vector<8x128xf32>
    %c4 = arith.constant 4 : index
    %c0_11 = arith.constant 0 : index
    %c0_12 = arith.constant 0 : index
    %11 = vector.load %arg2[%c4, %c0_11, %c0_12] : memref<6x8x128xf32, #tpu.memory_space<vmem>>, vector<1x8x128xf32>
    %12 = vector.shape_cast %11 : vector<1x8x128xf32> to vector<8x128xf32>
    %c5 = arith.constant 5 : index
    %c0_13 = arith.constant 0 : index
    %c0_14 = arith.constant 0 : index
    %13 = vector.load %arg2[%c5, %c0_13, %c0_14] : memref<6x8x128xf32, #tpu.memory_space<vmem>>, vector<1x8x128xf32>
    %14 = vector.shape_cast %13 : vector<1x8x128xf32> to vector<8x128xf32>
    %15 = arith.subf %8, %4 : vector<8x128xf32>
    %16 = arith.subf %10, %6 : vector<8x128xf32>
    %17 = arith.subf %12, %4 : vector<8x128xf32>
    %18 = arith.subf %14, %6 : vector<8x128xf32>
    %19 = arith.subf %12, %8 : vector<8x128xf32>
    %20 = arith.subf %14, %10 : vector<8x128xf32>
    %cst = arith.constant 0.000000e+00 : f32
    %21 = arith.subf %cst, %0 : f32
    %22 = arith.mulf %15, %15 : vector<8x128xf32>
    %23 = arith.mulf %16, %16 : vector<8x128xf32>
    %24 = arith.addf %22, %23 : vector<8x128xf32>
    %25 = math.rsqrt %24 : vector<8x128xf32>
    %26 = vector.broadcast %21 : f32 to vector<8x128xf32>
    %27 = arith.mulf %26, %25 : vector<8x128xf32>
    %cst_15 = arith.constant 0.000000e+00 : f32
    %28 = arith.subf %cst_15, %1 : f32
    %29 = arith.mulf %17, %17 : vector<8x128xf32>
    %30 = arith.mulf %18, %18 : vector<8x128xf32>
    %31 = arith.addf %29, %30 : vector<8x128xf32>
    %32 = math.rsqrt %31 : vector<8x128xf32>
    %33 = vector.broadcast %28 : f32 to vector<8x128xf32>
    %34 = arith.mulf %33, %32 : vector<8x128xf32>
    %cst_16 = arith.constant 0.000000e+00 : f32
    %35 = arith.subf %cst_16, %2 : f32
    %36 = arith.mulf %19, %19 : vector<8x128xf32>
    %37 = arith.mulf %20, %20 : vector<8x128xf32>
    %38 = arith.addf %36, %37 : vector<8x128xf32>
    %39 = math.rsqrt %38 : vector<8x128xf32>
    %40 = vector.broadcast %35 : f32 to vector<8x128xf32>
    %41 = arith.mulf %40, %39 : vector<8x128xf32>
    %42 = arith.addf %27, %34 : vector<8x128xf32>
    %43 = arith.addf %42, %41 : vector<8x128xf32>
    %c0_17 = arith.constant 0 : index
    %c0_18 = arith.constant 0 : index
    %44 = vector.load %arg3[%c0_17, %c0_18] : memref<8x128xf32, #tpu.memory_space<vmem>>, vector<8x128xf32>
    tpu.vector_store %arg3[%c0_17, %c0_18], %43 {strides = array<i32>} : memref<8x128xf32, #tpu.memory_space<vmem>>, vector<8x128xf32>,
    return
  }
  func.func @transform_0(%arg0: i32) -> i32 {
    %c0_i32 = arith.constant 0 : i32
    %c0_i32_0 = arith.constant 0 : i32
    return %c0_i32 : i32
  }
  func.func @transform_1(%arg0: i32) -> (i32, i32, i32) {
    %c0_i32 = arith.constant 0 : i32
    %c0_i32_0 = arith.constant 0 : i32
    %c0_i32_1 = arith.constant 0 : i32
    return %c0_i32, %arg0, %c0_i32_0 : i32, i32, i32
  }
  func.func @transform_2(%arg0: i32) -> (i32, i32) {
    %c0_i32 = arith.constant 0 : i32
    %c0_i32_0 = arith.constant 0 : i32
    return %arg0, %c0_i32 : i32, i32
  }
}

</mosaic_0001>

<bundles_post_ra>
// kernel: vq_pallas.2
= control target key start
LH: loop header
LB: loop body
LE: loop exit
PB: predicated region body
PF: predicated region fallthrough
CT: control target
= control target key end

     0   :  { %7 = vsyncpa [#allocation3], 0  ;;  %s162_s12 = smov [#allocation2]   ;;  %s208_s0 = inlined_call_operand.vmem [shape: f32[3], index: 0, kind: input, shape index: {}]   ;;  %s209_s1 = inlined_call_operand.vmem [shape: f32[1,6,8,128], index: 1, kind: input, shape index: {}]   ;;  %s210_s2 = inlined_call_operand.vmem [shape: f32[8,128], index: 2, kind: output, shape index: {}]  }
   0x1   :  { %s13_s11 = sshll.u32 %s208_s0, 4  ;;  %s14_s11 = int_to_ptr.vmem [resolvable:$true] %s13_s11 }
   0x2   :  { %16 = dma.vmem_to_smem %s14_s11, 16, %s162_s12, [#allocation3]  }
   0x3   :  { %160 = dma.done.wait [#allocation3], 16  }
   0x4   :  { %161 = vsyncadd [#allocation3], 4294967280 }
   0x5   :  { %23 = sfence }
   0x6   :  { %v24_v0 = vld [vmem:[%s209_s1] sm:$0xff]  ;;  %v134_v1 = vld [vmem:[%s209_s1 + $0x8] sm:$0xff]  ;;  %v135_v2 = vld [vmem:[%s209_s1 + $0x10] sm:$0xff]  ;;  %s58_s24 = sld [smem:[#allocation2]] }
   0x7   :  { %v136_v3 = vld [vmem:[%s209_s1 + $0x18] sm:$0xff]  ;;  %v137_v4 = vld [vmem:[%s209_s1 + $0x20] sm:$0xff]  ;;  %v138_v5 = vld [vmem:[%s209_s1 + $0x28] sm:$0xff]  ;;  %v72_v6 = vsub.f32 %v135_v2, %v24_v0  ;;  %s199_s1 = sld [smem:[#allocation2 + $0x1]] }
   0x8   :  { %v73_v7 = vsub.f32 %v136_v3, %v134_v1  ;;  %v74_v8 = vsub.f32 %v137_v4, %v24_v0  ;;  %v75_v9 = vsub.f32 %v138_v5, %v134_v1  ;;  %v76_v10 = vsub.f32 %v137_v4, %v135_v2  ;;  %s201_s25 = sld [smem:[#allocation2 + $0x2]] }
   0x9   :  { %v77_v11 = vsub.f32 %v138_v5, %v136_v3  ;;  %v79_v12 = vmul.f32 %v72_v6, %v72_v6 }
   0xa   :  { %v80_v13 = vmul.f32 %v73_v7, %v73_v7  ;;  %v95_v14 = vmul.f32 %v74_v8, %v74_v8  ;;  %v96_v15 = vmul.f32 %v75_v9, %v75_v9  ;;  %v111_v16 = vmul.f32 %v76_v10, %v76_v10 }
   0xb   :  { %v112_v17 = vmul.f32 %v77_v11, %v77_v11 }
   0xc   :  { %v81_v18 = vadd.f32 %v80_v13, %v79_v12  ;;  %v97_v19 = vadd.f32 %v96_v15, %v95_v14  ;;  %s78_s26 = ssub.f32 0.0, %s58_s24 }
   0xd   :  { %v113_v20 = vadd.f32 %v112_v17, %v111_v16  ;;  %s94_s27 = ssub.f32 0.0, %s199_s1 }
   0xe   :  { %142 = vrsqrt.f32 %v81_v18  ;;  %vm88_vm0 = vweird.f32 %v81_v18  ;;  %vm104_vm2 = vweird.f32 %v97_v19  ;;  %s110_s28 = ssub.f32 0.0, %s201_s25  ;;  %v92_v36 = vstv %s78_s26 }
   0xf   :  { %144 = vrsqrt.f32 %v97_v19  ;;  %vm120_vm4 = vweird.f32 %v113_v20  ;;  %v108_v39 = vstv %s94_s27 }
  0x10   :  { %146 = vrsqrt.f32 %v113_v20  ;;  %v124_v42 = vstv %s110_s28 }
  0x14   :  { %v143_v21 = vpop.eup %142 }
  0x15   :  { %v145_v22 = vpop.eup %144  ;;  %v83_v23 = vmul.f32 %v143_v21, %v81_v18  ;;  %vm89_vm1 = vweird.f32 %v143_v21 }
  0x16   :  { %v147_v24 = vpop.eup %146  ;;  %v99_v25 = vmul.f32 %v145_v22, %v97_v19  ;;  %vm105_vm3 = vweird.f32 %v145_v22  ;;  %vm90_vm6 = vmor %vm88_vm0, %vm89_vm1 }
  0x17   :  { %v84_v26 = vmul.f32 %v143_v21, %v83_v23  ;;  %v115_v27 = vmul.f32 %v147_v24, %v113_v20  ;;  %vm121_vm5 = vweird.f32 %v147_v24  ;;  %vm106_vm7 = vmor %vm104_vm2, %vm105_vm3 }
  0x18   :  { %v100_v28 = vmul.f32 %v145_v22, %v99_v25  ;;  %vm122_vm8 = vmor %vm120_vm4, %vm121_vm5 }
  0x19   :  { %v85_v29 = vmul.f32 0.5, %v84_v26  ;;  %v116_v30 = vmul.f32 %v147_v24, %v115_v27 }
  0x1a   :  { %v101_v31 = vmul.f32 0.5, %v100_v28 }
  0x1b   :  { %v86_v32 = vsub.f32 1.5, %v85_v29  ;;  %v117_v33 = vmul.f32 0.5, %v116_v30 }
  0x1c   :  { %v102_v34 = vsub.f32 1.5, %v101_v31 }
  0x1d   :  { %v87_v35 = vmul.f32 %v143_v21, %v86_v32  ;;  %v118_v37 = vsub.f32 1.5, %v117_v33 }
  0x1e   :  { %v103_v38 = vmul.f32 %v145_v22, %v102_v34 }
  0x1f   :  { %v91_v40 = vsel %vm90_vm6, %v143_v21, %v87_v35  ;;  %v119_v41 = vmul.f32 %v147_v24, %v118_v37 }
  0x20   :  { %v93_v43 = vmul.f32 %v92_v36, %v91_v40  ;;  %v107_v44 = vsel %vm106_vm7, %v145_v22, %v103_v38 }
  0x21   :  { %v109_v45 = vmul.f32 %v108_v39, %v107_v44  ;;  %v123_v46 = vsel %vm122_vm8, %v147_v24, %v119_v41 }
  0x22   :  { %v125_v47 = vmul.f32 %v124_v42, %v123_v46 }
  0x23   :  { %v126_v48 = vadd.f32 %v109_v45, %v93_v43 }
  0x25   :  { %v127_v49 = vadd.f32 %v126_v48, %v125_v47 }
  0x27   :  { %128 = vst [vmem:[%s210_s2] sm:$0xff] %v127_v49 }
  0x28   :  { %133 = vsyncpa [#allocation3], 1 }

</bundles_post_ra>
